<compile_context>
chip_gen: v5e
topology: v5e:2x2
jax: 0.10.0
libtpu: 0.0.40
codegen_flags: <defaults>
</compile_context>

<pallas_src>
import functools

import jax
import jax.numpy as jnp
from jax import lax
from jax.experimental import pallas as pl
from jax.experimental.pallas import tpu as pltpu

HIDDEN_SIZE = 30
NUM_CLASSES = 3


def _round_up(n, m):
    return ((n + m - 1) // m) * m


def _cdiv(a, b):
    return -(-a // b)


def _mlp_dc_kernel(x_ref, w_ref, b_ref, ot_ref):
    # x_ref: (tb, 30), w_ref: (3, 30), b_ref: (3, 1), ot_ref: (3, tb)
    x = x_ref[...].astype(jnp.float32)
    w = w_ref[...].astype(jnp.float32)
    b = b_ref[...].astype(jnp.float32)

    # logits^T (3, tb) = W (3, 30) . x (tb, 30)^T + b
    # Contract both last dims (trans-B matmul) so the result is lane-dense in
    # batch.  HIGHEST precision => true f32 accumulation (fixes prior accuracy
    # failure; MXU has huge slack in this HBM-bound kernel).
    logits = lax.dot_general(
        w, x,
        dimension_numbers=(((1,), (1,)), ((), ())),
        preferred_element_type=jnp.float32,
        precision=lax.Precision.HIGHEST,
    ) + b                                                    # (3, tb)

    # Numerically stable softmax over the class axis (3 sublanes).
    m = jnp.max(logits, axis=0, keepdims=True)               # (1, tb)
    e = jnp.exp(logits - m)                                   # (3, tb)
    denom = jnp.sum(e, axis=0, keepdims=True)                 # (1, tb)
    # Exact divide: rows sum to 1 to f32 precision; the VALU divide is nowhere
    # near the bottleneck here.
    ot_ref[...] = (e / denom).astype(ot_ref.dtype)


@functools.partial(jax.jit, static_argnames=("tb",))
def mlp_dc_forward(x, weight, bias, *, tb=16384):
    """x: (B, 30), weight: (3, 30), bias: (3,) -> (B, 3) softmax probs."""
    B = x.shape[0]
    itemsize = jnp.dtype(x.dtype).itemsize

    # --- batch tiling -------------------------------------------------------
    b128 = _round_up(B, 128)                      # lane-dense minimum
    tb = max(128, min(_round_up(tb, 128), b128, 32768))
    n_tiles = _cdiv(b128, tb)
    # v7x megacore: the "parallel" grid axis only helps if there are >= 2
    # tiles; split large single-tile batches in two.
    if n_tiles == 1 and b128 >= 2048:
        n_tiles = 2
    tb = _round_up(_cdiv(b128, n_tiles), 128)
    b_pad = tb * n_tiles

    # Pad only if needed (zero rows; they stay finite through the softmax and
    # are sliced away).  When B is already a multiple of the tile size there is
    # no extra HBM pass over the input at all.
    x_p = x if b_pad == B else jnp.pad(x, ((0, b_pad - B), (0, 0)))
    bias2d = bias.reshape(NUM_CLASSES, 1)

    # --- VMEM budget ----------------------------------------------------------
    # The (tb, 30) input block is lane-padded to (tb, 128) in VMEM; the (3, tb)
    # output block is sublane-padded to (8, tb).  Both are double-buffered.
    x_block = tb * 128 * itemsize
    o_block = 8 * tb * itemsize
    vmem_limit = min(max(2 * (x_block + o_block) + (8 << 20), 32 << 20), 48 << 20)

    cost = pl.CostEstimate(
        flops=2 * NUM_CLASSES * HIDDEN_SIZE * b_pad,
        transcendentals=NUM_CLASSES * b_pad,
        bytes_accessed=(HIDDEN_SIZE + NUM_CLASSES) * b_pad * itemsize
        + (NUM_CLASSES * HIDDEN_SIZE + NUM_CLASSES) * 4,
    )

    out_t = pl.pallas_call(
        _mlp_dc_kernel,
        out_shape=jax.ShapeDtypeStruct((NUM_CLASSES, b_pad), x.dtype),
        grid_spec=pltpu.PrefetchScalarGridSpec(
            num_scalar_prefetch=0,
            grid=(n_tiles,),
            in_specs=[
                pl.BlockSpec((tb, HIDDEN_SIZE), lambda i: (i, 0)),
                pl.BlockSpec((NUM_CLASSES, HIDDEN_SIZE), lambda i: (0, 0)),
                pl.BlockSpec((NUM_CLASSES, 1), lambda i: (0, 0)),
            ],
            out_specs=pl.BlockSpec((NUM_CLASSES, tb), lambda i: (0, i)),
        ),
        compiler_params=pltpu.CompilerParams(
            dimension_semantics=("parallel",),
            vmem_limit_bytes=vmem_limit,
        ),
        cost_estimate=cost,
    )(x_p, weight, bias2d)

    # Slice away batch padding; return in the PyTorch (B, 3) orientation.
    return out_t[:, :B].T


def _reference(x, weight, bias):
    logits = x @ weight.T + bias
    m = jnp.max(logits, axis=1, keepdims=True)
    e = jnp.exp(logits - m)
    return e / jnp.sum(e, axis=1, keepdims=True)


if __name__ == "__main__":
    key = jax.random.PRNGKey(0)
    k_x, k_w, k_b = jax.random.split(key, 3)

    batch = 8
    x = jax.random.normal(k_x, (batch, HIDDEN_SIZE), dtype=jnp.float32)

    # Deterministic param init mimicking nn.Linear's uniform(-1/sqrt(fan_in), +)
    bound = 1.0 / (HIDDEN_SIZE ** 0.5)
    weight = jax.random.uniform(
        k_w, (NUM_CLASSES, HIDDEN_SIZE), minval=-bound, maxval=bound,
        dtype=jnp.float32)
    bias = jax.random.uniform(
        k_b, (NUM_CLASSES,), minval=-bound, maxval=bound, dtype=jnp.float32)

    out = jax.block_until_ready(mlp_dc_forward(x, weight, bias))
    ref = _reference(x, weight, bias)
    assert out.shape == (batch, NUM_CLASSES)
    assert jnp.allclose(out, ref, atol=2e-3, rtol=2e-3)
    assert jnp.allclose(jnp.sum(out, axis=1), jnp.ones((batch,)), atol=1e-5)

    # Exercise the padding + multi-tile (grid > 1) path with a batch that is
    # not a multiple of the tile size.
    batch2 = 300
    x2 = jax.random.normal(k_x, (batch2, HIDDEN_SIZE), dtype=jnp.float32)
    out2 = jax.block_until_ready(mlp_dc_forward(x2, weight, bias, tb=128))
    ref2 = _reference(x2, weight, bias)
    assert out2.shape == (batch2, NUM_CLASSES)
    assert jnp.allclose(out2, ref2, atol=2e-3, rtol=2e-3)
    assert jnp.allclose(jnp.sum(out2, axis=1), jnp.ones((batch2,)), atol=1e-5)

    print("KERNEL_OK")
</pallas_src>

<mosaic_0001>
module attributes {stable_mosaic.version = 11 : i64} {
  func.func @_mlp_dc_kernel(%arg0: i32, %arg1: memref<128x30xf32, #tpu.memory_space<vmem>>, %arg2: memref<3x30xf32, #tpu.memory_space<vmem>>, %arg3: memref<3x1xf32, #tpu.memory_space<vmem>>, %arg4: memref<3x128xf32, #tpu.memory_space<vmem>>) attributes {dimension_semantics = [#tpu.dimension_semantics<parallel>], iteration_bounds = array<i64: 1>, scalar_prefetch = 0 : i64, scratch_operands = 0 : i64, tpu.core_type = #tpu.core_type<tc>, window_params = [{transform_indices = @transform_0, window_bounds = array<i64: 128, 30>}, {pipeline_mode = #tpu.pipeline_mode<synchronous>, transform_indices = @transform_1, window_bounds = array<i64: 3, 30>}, {pipeline_mode = #tpu.pipeline_mode<synchronous>, transform_indices = @transform_2, window_bounds = array<i64: 3, 1>}, {transform_indices = @transform_3, window_bounds = array<i64: 3, 128>}]} {
    %c0 = arith.constant 0 : index
    %c0_0 = arith.constant 0 : index
    %0 = vector.load %arg1[%c0, %c0_0] : memref<128x30xf32, #tpu.memory_space<vmem>>, vector<128x30xf32>
    %c0_1 = arith.constant 0 : index
    %c0_2 = arith.constant 0 : index
    %1 = vector.load %arg2[%c0_1, %c0_2] : memref<3x30xf32, #tpu.memory_space<vmem>>, vector<3x30xf32>
    %c0_3 = arith.constant 0 : index
    %c0_4 = arith.constant 0 : index
    %2 = vector.load %arg3[%c0_3, %c0_4] : memref<3x1xf32, #tpu.memory_space<vmem>>, vector<3x1xf32>
    %cst = arith.constant dense<0.000000e+00> : vector<3x128xf32>
    %3 = tpu.matmul %1, %0, %cst {dimension_numbers = #tpu.dot_dimension_numbers<[1], [1], [0], [0], [0, 0, 1, 0], [], []>, precision = #tpu.contract_precision<fp32>} : vector<3x30xf32>, vector<128x30xf32>, vector<3x128xf32> -> vector<3x128xf32>
    %4 = vector.broadcast %2 : vector<3x1xf32> to vector<3x128xf32>
    %5 = arith.addf %3, %4 : vector<3x128xf32>
    %cst_5 = arith.constant dense<0xFF800000> : vector<128xf32>
    %6 = vector.multi_reduction <maximumf>, %5, %cst_5 [0] : vector<3x128xf32> to vector<128xf32>
    %7 = vector.shape_cast %6 : vector<128xf32> to vector<1x128xf32>
    %8 = vector.broadcast %7 : vector<1x128xf32> to vector<3x128xf32>
    %9 = arith.subf %5, %8 : vector<3x128xf32>
    %10 = math.exp %9 : vector<3x128xf32>
    %cst_6 = arith.constant dense<0.000000e+00> : vector<128xf32>
    %11 = vector.multi_reduction <add>, %10, %cst_6 [0] : vector<3x128xf32> to vector<128xf32>
    %12 = vector.shape_cast %11 : vector<128xf32> to vector<1x128xf32>
    %13 = vector.broadcast %12 : vector<1x128xf32> to vector<3x128xf32>
    %14 = arith.divf %10, %13 : vector<3x128xf32>
    %c0_7 = arith.constant 0 : index
    %c0_8 = arith.constant 0 : index
    %15 = vector.load %arg4[%c0_7, %c0_8] : memref<3x128xf32, #tpu.memory_space<vmem>>, vector<3x128xf32>
    tpu.vector_store %arg4[%c0_7, %c0_8], %14 {strides = array<i32>} : memref<3x128xf32, #tpu.memory_space<vmem>>, vector<3x128xf32>,
    return
  }
  func.func @transform_0(%arg0: i32) -> (i32, i32) {
    %c0_i32 = arith.constant 0 : i32
    %c0_i32_0 = arith.constant 0 : i32
    return %arg0, %c0_i32 : i32, i32
  }
  func.func @transform_1(%arg0: i32) -> (i32, i32) {
    %c0_i32 = arith.constant 0 : i32
    %c0_i32_0 = arith.constant 0 : i32
    %c0_i32_1 = arith.constant 0 : i32
    return %c0_i32, %c0_i32_0 : i32, i32
  }
  func.func @transform_2(%arg0: i32) -> (i32, i32) {
    %c0_i32 = arith.constant 0 : i32
    %c0_i32_0 = arith.constant 0 : i32
    %c0_i32_1 = arith.constant 0 : i32
    return %c0_i32, %c0_i32_0 : i32, i32
  }
  func.func @transform_3(%arg0: i32) -> (i32, i32) {
    %c0_i32 = arith.constant 0 : i32
    %c0_i32_0 = arith.constant 0 : i32
    return %c0_i32, %arg0 : i32, i32
  }
}

</mosaic_0001>

<bundles_post_ra>
// kernel: mlp_dc_forward.1
= control target key start
LH: loop header
LB: loop body
LE: loop exit
PB: predicated region body
PF: predicated region fallthrough
CT: control target
= control target key end

     0   :  { %vm37_vm0 = vcmask 244736   ;;  %vm430_vm1 = vcmask 1042432   ;;  %s805_s0 = inlined_call_operand.vmem [shape: f32[128,30], index: 0, kind: input, shape index: {}]   ;;  %s806_s1 = inlined_call_operand.vmem [shape: f32[3,30], index: 1, kind: input, shape index: {}]   ;;  %s807_s2 = inlined_call_operand.vmem [shape: f32[3,1], index: 2, kind: input, shape index: {}]   ;;  %s808_s3 = inlined_call_operand.vmem [shape: f32[3,128], index: 3, kind: output, shape index: {}]  }
   0x1   :  { %v29_v0 = vld [vmem:[%s805_s0 + $0x78] sm:$0xff]  ;;  %v28_v1 = vld [vmem:[%s805_s0 + $0x70] sm:$0xff]  ;;  %v27_v2 = vld [vmem:[%s805_s0 + $0x68] sm:$0xff] }
   0x2   :  { %v87_v3 = vsel %vm37_vm0, %v29_v0, 0  ;;  %v84_v4 = vsel %vm37_vm0, %v28_v1, 0  ;;  %v81_v5 = vsel %vm37_vm0, %v27_v2, 0  ;;  %v26_v6 = vld [vmem:[%s805_s0 + $0x60] sm:$0xff]  ;;  %v25_v7 = vld [vmem:[%s805_s0 + $0x58] sm:$0xff]  ;;  %v24_v17 = vld [vmem:[%s805_s0 + $0x50] sm:$0xff] }
   0x3   :  { %v513_v8 = vand.u32 4294901760, %v87_v3  ;;  %v515_v9 = vand.u32 4294901760, %v84_v4  ;;  %v517_v10 = vand.u32 4294901760, %v81_v5  ;;  %v78_v11 = vsel %vm37_vm0, %v26_v6, 0  ;;  %v23_v26 = vld [vmem:[%s805_s0 + $0x48] sm:$0xff]  ;;  %v22_v34 = vld [vmem:[%s805_s0 + $0x40] sm:$0xff] }
   0x4   :  { %v520_v12 = vand.u32 4294901760, %v78_v11  ;;  %v75_v16 = vsel %vm37_vm0, %v25_v7, 0  ;;  %v72_v21 = vsel %vm37_vm0, %v24_v17, 0  ;;  %v69_v29 = vsel %vm37_vm0, %v23_v26, 0  ;;  %v21_v41 = vld [vmem:[%s805_s0 + $0x38] sm:$0xff]  ;;  %v20_v48 = vld [vmem:[%s805_s0 + $0x30] sm:$0xff] }
   0x5   :  { %90 = vmatpush.xpose.msra.mxu0 %v513_v8  ;;  %v524_v13 = vsub.f32 %v87_v3, %v513_v8  ;;  %v527_v14 = vsub.f32 %v84_v4, %v515_v9  ;;  %v530_v15 = vsub.f32 %v81_v5, %v517_v10  ;;  %286 = vmatpush.xpose.msra.mxu3 %v513_v8  ;;  %v540_v20 = vand.u32 4294901760, %v75_v16  ;;  %v19_v55 = vld [vmem:[%s805_s0 + $0x28] sm:$0xff]  ;;  %v18_v62 = vld [vmem:[%s805_s0 + $0x20] sm:$0xff]  ;;  %v17_v5 = vld [vmem:[%s805_s0 + $0x18] sm:$0xff] }
   0x6   :  { %v552_v25 = vsub.f32 %v78_v11, %v520_v12  ;;  %v559_v28 = vand.u32 4294901760, %v72_v21  ;;  %v575_v35 = vand.u32 4294901760, %v69_v29  ;;  %v66_v36 = vsel %vm37_vm0, %v22_v34, 0  ;;  %v15_v34 = vld [vmem:[%s805_s0 + $0x8] sm:$0xff] }
   0x7   :  { %v132_v18 = vand.u32 4294901760, %v524_v13  ;;  %v138_v19 = vand.u32 4294901760, %v527_v14  ;;  %233 = vmatpush.xpose.msra.mxu2 %v524_v13  ;;  %v144_v24 = vand.u32 4294901760, %v530_v15  ;;  %v568_v33 = vsub.f32 %v75_v16, %v540_v20 }
   0x8   :  { %v150_v32 = vand.u32 4294901760, %v552_v25  ;;  %v584_v40 = vsub.f32 %v72_v21, %v559_v28  ;;  %v592_v42 = vsub.f32 %v69_v29, %v575_v35  ;;  %v594_v43 = vand.u32 4294901760, %v66_v36 }
   0x9   :  { %v133_v22 = vsub.f32 %v524_v13, %v132_v18  ;;  %92 = vmatpush.xpose.msra.mxu0 %v515_v9  ;;  %v139_v23 = vsub.f32 %v527_v14, %v138_v19  ;;  %288 = vmatpush.xpose.msra.mxu3 %v515_v9  ;;  %v145_v31 = vsub.f32 %v530_v15, %v144_v24  ;;  %v156_v39 = vand.u32 4294901760, %v568_v33  ;;  %v30_v13 = vld [vmem:[%s806_s1] sm:$0x7] }
   0xa   :  { %v151_v38 = vsub.f32 %v552_v25, %v150_v32  ;;  %v162_v46 = vand.u32 4294901760, %v584_v40  ;;  %v63_v47 = vsel %vm37_vm0, %v21_v41, 0  ;;  %v168_v49 = vand.u32 4294901760, %v592_v42 }
   0xb   :  { %v134_v27 = vand.u32 4294901760, %v133_v22  ;;  %236 = vmatpush.xpose.msra.mxu2 %v527_v14  ;;  %v140_v30 = vand.u32 4294901760, %v139_v23  ;;  %v146_v37 = vand.u32 4294901760, %v145_v31  ;;  %v157_v45 = vsub.f32 %v568_v33, %v156_v39  ;;  %v16_v22 = vld [vmem:[%s805_s0 + $0x10] sm:$0xff] }
   0xc   :  { %v152_v44 = vand.u32 4294901760, %v151_v38  ;;  %v609_v50 = vsub.f32 %v66_v36, %v594_v43  ;;  %v163_v52 = vsub.f32 %v584_v40, %v162_v46  ;;  %v615_v53 = vand.u32 4294901760, %v63_v47 }
   0xd   :  { %135 = vmatpush.xpose.msra.mxu1 %v134_v27  ;;  %94 = vmatpush.xpose.msra.mxu0 %v517_v10  ;;  %v158_v51 = vand.u32 4294901760, %v157_v45  ;;  %v60_v54 = vsel %vm37_vm0, %v20_v48, 0  ;;  %v169_v56 = vsub.f32 %v592_v42, %v168_v49  ;;  %v57_v61 = vsel %vm37_vm0, %v19_v55, 0 }
   0xe   :  { %290 = vmatpush.xpose.msra.mxu3 %v517_v10  ;;  %v174_v57 = vand.u32 4294901760, %v609_v50  ;;  %v164_v58 = vand.u32 4294901760, %v163_v52  ;;  %v629_v59 = vsub.f32 %v63_v47, %v615_v53  ;;  %v631_v60 = vand.u32 4294901760, %v60_v54  ;;  %v14_v47 = vld [vmem:[%s805_s0] sm:$0xff] }
   0xf   :  { %239 = vmatpush.xpose.msra.mxu2 %v530_v15  ;;  %v170_v63 = vand.u32 4294901760, %v169_v56  ;;  %v647_v3 = vand.u32 4294901760, %v57_v61  ;;  %v54_v4 = vsel %vm37_vm0, %v18_v62, 0  ;;  %v51_v21 = vsel %vm37_vm0, %v17_v5, 0 }
  0x10   :  { %v175_v0 = vsub.f32 %v609_v50, %v174_v57  ;;  %v180_v1 = vand.u32 4294901760, %v629_v59  ;;  %v645_v2 = vsub.f32 %v60_v54, %v631_v60  ;;  %v655_v6 = vand.u32 4294901760, %v54_v4 }
  0x11   :  { %141 = vmatpush.xpose.msra.mxu1 %v140_v30  ;;  %96 = vmatpush.xpose.msra.mxu0 %v520_v12  ;;  %v663_v17 = vsub.f32 %v57_v61, %v647_v3  ;;  %v679_v30 = vand.u32 4294901760, %v51_v21  ;;  %v48_v31 = vsel %vm37_vm0, %v16_v22, 0  ;;  %v45_v45 = vsel %vm37_vm0, %v15_v34, 0 }
  0x12   :  { %292 = vmatpush.xpose.msra.mxu3 %v520_v12  ;;  %v176_v7 = vand.u32 4294901760, %v175_v0  ;;  %v181_v11 = vsub.f32 %v629_v59, %v180_v1  ;;  %v186_v16 = vand.u32 4294901760, %v645_v2  ;;  %v672_v23 = vsub.f32 %v54_v4, %v655_v6 }
  0x13   :  { %242 = vmatpush.xpose.msra.mxu2 %v552_v25  ;;  %v192_v29 = vand.u32 4294901760, %v663_v17  ;;  %v693_v41 = vsub.f32 %v51_v21, %v679_v30  ;;  %v711_v55 = vand.u32 4294901760, %v45_v45  ;;  %v42_v56 = vsel %vm37_vm0, %v14_v47, 0 }
  0x14   :  { %v182_v26 = vand.u32 4294901760, %v181_v11  ;;  %v187_v27 = vsub.f32 %v645_v2, %v186_v16  ;;  %v198_v36 = vand.u32 4294901760, %v672_v23  ;;  %v724_v0 = vand.u32 4294901760, %v42_v56 }
  0x15   :  { %147 = vmatpush.xpose.msra.mxu1 %v146_v37  ;;  %98 = vmatpush.xpose.msra.mxu0 %v540_v20  ;;  %v193_v38 = vsub.f32 %v663_v17, %v192_v29  ;;  %v204_v52 = vand.u32 4294901760, %v693_v41  ;;  %v39_v14 = vsel %vm37_vm0, %v30_v13, 0 }
  0x16   :  { %294 = vmatpush.xpose.msra.mxu3 %v540_v20  ;;  %v188_v37 = vand.u32 4294901760, %v187_v27  ;;  %v199_v48 = vsub.f32 %v672_v23, %v198_v36  ;;  %v734_v11 = vsub.f32 %v42_v56, %v724_v0 }
  0x17   :  { %245 = vmatpush.xpose.msra.mxu2 %v568_v33  ;;  %v205_v61 = vsub.f32 %v693_v41, %v204_v52 }
  0x19   :  { %153 = vmatpush.xpose.msra.mxu1 %v152_v44  ;;  %100 = vmatpush.xpose.msra.mxu0 %v559_v28  ;;  %v695_v44 = vand.u32 4294901760, %v48_v31  ;;  %v206_v4 = vand.u32 4294901760, %v205_v61 }
  0x1a   :  { %296 = vmatpush.xpose.msra.mxu3 %v559_v28 }
  0x1b   :  { %248 = vmatpush.xpose.msra.mxu2 %v584_v40  ;;  %v709_v54 = vsub.f32 %v48_v31, %v695_v44 }
  0x1d   :  { %159 = vmatpush.xpose.msra.mxu1 %v158_v51  ;;  %102 = vmatpush.xpose.msra.mxu0 %v575_v35  ;;  %v194_v51 = vand.u32 4294901760, %v193_v38  ;;  %v210_v62 = vand.u32 4294901760, %v709_v54 }
  0x1e   :  { %298 = vmatpush.xpose.msra.mxu3 %v575_v35 }
  0x1f   :  { %251 = vmatpush.xpose.msra.mxu2 %v592_v42  ;;  %v211_v5 = vsub.f32 %v709_v54, %v210_v62 }
  0x21   :  { %165 = vmatpush.xpose.msra.mxu1 %v164_v58  ;;  %104 = vmatpush.xpose.msra.mxu0 %v594_v43  ;;  %v200_v58 = vand.u32 4294901760, %v199_v48  ;;  %v212_v21 = vand.u32 4294901760, %v211_v5 }
  0x22   :  { %300 = vmatpush.xpose.msra.mxu3 %v594_v43 }
  0x23   :  { %254 = vmatpush.xpose.msra.mxu2 %v609_v50 }
  0x25   :  { %171 = vmatpush.xpose.msra.mxu1 %v170_v63  ;;  %106 = vmatpush.xpose.msra.mxu0 %v615_v53  ;;  %v722_v63 = vsub.f32 %v45_v45, %v711_v55 }
  0x26   :  { %302 = vmatpush.xpose.msra.mxu3 %v615_v53 }
  0x27   :  { %257 = vmatpush.xpose.msra.mxu2 %v629_v59 }
  0x29   :  { %177 = vmatpush.xpose.msra.mxu1 %v176_v7  ;;  %108 = vmatpush.xpose.msra.mxu0 %v631_v60  ;;  %v216_v7 = vand.u32 4294901760, %v722_v63 }
  0x2a   :  { %304 = vmatpush.xpose.msra.mxu3 %v631_v60 }
  0x2b   :  { %260 = vmatpush.xpose.msra.mxu2 %v645_v2  ;;  %v217_v22 = vsub.f32 %v722_v63, %v216_v7 }
  0x2d   :  { %183 = vmatpush.xpose.msra.mxu1 %v182_v26  ;;  %110 = vmatpush.xpose.msra.mxu0 %v647_v3  ;;  %v222_v26 = vand.u32 4294901760, %v734_v11  ;;  %v218_v27 = vand.u32 4294901760, %v217_v22 }
  0x2e   :  { %306 = vmatpush.xpose.msra.mxu3 %v647_v3 }
  0x2f   :  { %263 = vmatpush.xpose.msra.mxu2 %v663_v17  ;;  %v223_v31 = vsub.f32 %v734_v11, %v222_v26 }
  0x31   :  { %189 = vmatpush.xpose.msra.mxu1 %v188_v37  ;;  %112 = vmatpush.xpose.msra.mxu0 %v655_v6  ;;  %v224_v34 = vand.u32 4294901760, %v223_v31 }
  0x32   :  { %308 = vmatpush.xpose.msra.mxu3 %v655_v6 }
  0x33   :  { %266 = vmatpush.xpose.msra.mxu2 %v672_v23 }
  0x35   :  { %195 = vmatpush.xpose.msra.mxu1 %v194_v51  ;;  %114 = vmatpush.xpose.msra.mxu0 %v679_v30 }
  0x36   :  { %310 = vmatpush.xpose.msra.mxu3 %v679_v30 }
  0x37   :  { %269 = vmatpush.xpose.msra.mxu2 %v693_v41 }
  0x39   :  { %201 = vmatpush.xpose.msra.mxu1 %v200_v58  ;;  %116 = vmatpush.xpose.msra.mxu0 %v695_v44 }
  0x3a   :  { %312 = vmatpush.xpose.msra.mxu3 %v695_v44 }
  0x3b   :  { %272 = vmatpush.xpose.msra.mxu2 %v709_v54 }
  0x3d   :  { %207 = vmatpush.xpose.msra.mxu1 %v206_v4  ;;  %118 = vmatpush.xpose.msra.mxu0 %v711_v55 }
  0x3e   :  { %314 = vmatpush.xpose.msra.mxu3 %v711_v55 }
  0x3f   :  { %275 = vmatpush.xpose.msra.mxu2 %v722_v63 }
  0x41   :  { %213 = vmatpush.xpose.msra.mxu1 %v212_v21  ;;  %120 = vmatpush.xpose.msra.mxu0 %v724_v0 }
  0x42   :  { %316 = vmatpush.xpose.msra.mxu3 %v724_v0 }
  0x43   :  { %278 = vmatpush.xpose.msra.mxu2 %v734_v11 }
  0x45   :  { %327 = vmatpush.xpose.msrb.mxu0 %v132_v18  ;;  %219 = vmatpush.xpose.msra.mxu1 %v218_v27 }
  0x49   :  { %331 = vmatpush.xpose.msrb.mxu0 %v138_v19  ;;  %225 = vmatpush.xpose.msra.mxu1 %v224_v34  ;;  %v31_v19 = vld [vmem:[%s807_s2] sm:$0x7] }
  0x4d   :  { %394 = vmatpush.xpose.msrb.mxu1 %v513_v8  ;;  %335 = vmatpush.xpose.msrb.mxu0 %v144_v24  ;;  %v121_v8 = vand.u32 4294901760, %v39_v14 }
  0x4f   :  { %227 = vmatmul.f32.vlgmr.msra.gmra.mxu1 %v121_v8 }
  0x51   :  { %396 = vmatpush.xpose.msrb.mxu1 %v515_v9  ;;  %339 = vmatpush.xpose.msrb.mxu0 %v150_v32  ;;  %v122_v9 = vsub.f32 %v39_v14, %v121_v8 }
  0x53   :  { %281 = vmatmul.f32.vlgmr.msra.gmra.mxu2 %v122_v9  ;;  %v123_v15 = vand.u32 4294901760, %v122_v9 }
  0x55   :  { %398 = vmatpush.xpose.msrb.mxu1 %v517_v10  ;;  %343 = vmatpush.xpose.msrb.mxu0 %v156_v39  ;;  %v124_v10 = vsub.f32 %v122_v9, %v123_v15 }
  0x56   :  { %320 = vmatmul.f32.vlgmr.msra.gmra.mxu3 %v123_v15 }
  0x57   :  { %v125_v18 = vand.u32 4294901760, %v124_v10 }
  0x59   :  { %400 = vmatpush.xpose.msrb.mxu1 %v520_v12  ;;  %347 = vmatpush.xpose.msrb.mxu0 %v162_v46  ;;  %v474_v12 = vmov 0  }
  0x5a   :  { %126 = vmatmul.f32.vlgmr.msra.gmra.mxu0 %v125_v18  ;;  %469 = vset.pattern.permute.xlu0 %v474_v12 }
  0x5b   :  { %34 = vperm.xlu0 %469, %v31_v19  }
  0x5d   :  { %402 = vmatpush.xpose.msrb.mxu1 %v540_v20  ;;  %351 = vmatpush.xpose.msrb.mxu0 %v168_v49 }
  0x61   :  { %404 = vmatpush.xpose.msrb.mxu1 %v559_v28  ;;  %355 = vmatpush.xpose.msrb.mxu0 %v174_v57 }
  0x65   :  { %406 = vmatpush.xpose.msrb.mxu1 %v575_v35  ;;  %359 = vmatpush.xpose.msrb.mxu0 %v180_v1 }
  0x69   :  { %408 = vmatpush.xpose.msrb.mxu1 %v594_v43  ;;  %363 = vmatpush.xpose.msrb.mxu0 %v186_v16 }
  0x6d   :  { %410 = vmatpush.xpose.msrb.mxu1 %v615_v53  ;;  %367 = vmatpush.xpose.msrb.mxu0 %v192_v29 }
  0x71   :  { %412 = vmatpush.xpose.msrb.mxu1 %v631_v60  ;;  %371 = vmatpush.xpose.msrb.mxu0 %v198_v36 }
  0x75   :  { %414 = vmatpush.xpose.msrb.mxu1 %v647_v3  ;;  %375 = vmatpush.xpose.msrb.mxu0 %v204_v52 }
  0x79   :  { %416 = vmatpush.xpose.msrb.mxu1 %v655_v6  ;;  %379 = vmatpush.xpose.msrb.mxu0 %v210_v62 }
  0x7d   :  { %418 = vmatpush.xpose.msrb.mxu1 %v679_v30  ;;  %383 = vmatpush.xpose.msrb.mxu0 %v216_v7 }
  0x81   :  { %420 = vmatpush.xpose.msrb.mxu1 %v695_v44  ;;  %387 = vmatpush.xpose.msrb.mxu0 %v222_v26 }
  0x84   :  { %389 = vmatmul.f32.vlgmr.msrb.gmra.mxu0 %v121_v8 }
  0x85   :  { %422 = vmatpush.xpose.msrb.mxu1 %v711_v55 }
  0x89   :  { %424 = vmatpush.xpose.msrb.mxu1 %v724_v0 }
  0x8c   :  { %426 = vmatmul.f32.vlgmr.msrb.gmra.mxu1 %v121_v8 }
  0xcc   :  { %v228_v28 = vpop.f32.mrf.mxu1 }
  0xcd   :  { %v35_v20 = vpop.permute.xlu0 %34 }
  0xd6   :  { %v282_v33 = vpop.f32.mrf.mxu2 }
  0xd7   :  { %v127_v24 = vpop.f32.mrf.mxu0 }
  0xd8   :  { %v128_v25 = vadd.f32 %v127_v24, %v35_v20 }
  0xd9   :  { %v321_v39 = vpop.f32.mrf.mxu3 }
  0xda   :  { %v229_v32 = vadd.f32 %v228_v28, %v128_v25 }
  0xdc   :  { %v283_v35 = vadd.f32 %v282_v33, %v229_v32 }
  0xde   :  { %v322_v40 = vadd.f32 %v321_v39, %v283_v35 }
 0x101   :  { %v390_v42 = vpop.f32.mrf.mxu0 }
 0x102   :  { %v391_v43 = vadd.f32 %v390_v42, %v322_v40 }
 0x109   :  { %v427_v46 = vpop.f32.mrf.mxu1 }
 0x10a   :  { %v428_v49 = vadd.f32 %v427_v46, %v391_v43 }
 0x10c   :  { %v431_v50 = vsel %vm430_vm1, %v428_v49, -inf }
 0x10d   :  { %v432_v53 = vrot.slane %v431_v50, 4 }
 0x10f   :  { %v433_v57 = vmax.f32 %v431_v50, %v432_v53 }
 0x111   :  { %v434_v59 = vrot.slane %v433_v57, 2 }
 0x113   :  { %v435_v60 = vmax.f32 %v433_v57, %v434_v59 }
 0x115   :  { %v436_v1 = vrot.slane %v435_v60, 1 }
 0x117   :  { %v437_v2 = vmax.f32 %v435_v60, %v436_v1 }
 0x119   :  { %v438_v3 = vsub.f32 %v428_v49, %v437_v2 }
 0x11b   :  { %v439_v6 = vmul.f32 1.442695, %v438_v3 }
 0x11d   :  { %470 = vpow2.f32 %v439_v6 }
 0x123   :  { %v471_v16 = vpop.eup %470 }
 0x124   :  { %v441_v17 = vsel %vm430_vm1, %v471_v16, 0.0 }
 0x125   :  { %v442_v23 = vrot.slane %v441_v17, 4 }
 0x127   :  { %v443_v29 = vadd.f32 %v442_v23, %v441_v17 }
 0x129   :  { %v444_v30 = vrot.slane %v443_v29, 2 }
 0x12b   :  { %v445_v36 = vadd.f32 %v444_v30, %v443_v29 }
 0x12d   :  { %v446_v37 = vrot.slane %v445_v36, 1 }
 0x12f   :  { %v447_v38 = vadd.f32 %v446_v37, %v445_v36 }
 0x131   :  { %472 = vrcp.f32 %v447_v38  ;;  %v459_v47 = vand.u32 2147483648, %v447_v38  ;;  %v457_v51 = vand.u32 2147483647, %v447_v38  ;;  %vm453_vm3 = vweird.f32 %v447_v38 }
 0x133   :  { %v460_v54 = vor.u32 1.1754944e-38, %v459_v47  ;;  %vm458_vm5 = vcmp.eq.f32.partialorder %v457_v51, 8.507059e+37 }
 0x137   :  { %v473_v41 = vpop.eup %472 }
 0x138   :  { %v449_v44 = vmul.f32 %v473_v41, %v447_v38  ;;  %vm454_vm2 = vweird.f32 %v473_v41 }
 0x139   :  { %vm455_vm4 = vmor %vm453_vm3, %vm454_vm2 }
 0x13a   :  { %v450_v45 = vsub.f32 1.0, %v449_v44 }
 0x13c   :  { %v451_v48 = vmul.f32 %v473_v41, %v450_v45 }
 0x13e   :  { %v452_v52 = vadd.f32 %v473_v41, %v451_v48 }
 0x140   :  { %v456_v55 = vsel %vm455_vm4, %v473_v41, %v452_v52 }
 0x141   :  { %v461_v56 = vsel %vm458_vm5, %v460_v54, %v456_v55 }
 0x142   :  { %v462_v58 = vmul.f32 %v471_v16, %v461_v56 }
 0x144   :  { %463 = vst [vmem:[%s808_s3] sm:$0x7] %v462_v58 }

</bundles_post_ra>
